<compile_context>
chip_gen: v6e
topology: v6e:2x2x1
jax: 0.10.0
libtpu: 0.0.40
codegen_flags: <defaults>
</compile_context>

<pallas_src>
import functools

import jax
import jax.numpy as jnp
from jax import lax
from jax.experimental import pallas as pl
from jax.experimental.pallas import tpu as pltpu

_LANES = 128
_SUBLANES = 8
_MAX_BLOCK_BYTES = 4 * 1024 * 1024   # per-block DMA size (Pallas double-buffers it)
_NUM_SPLITS = 2                      # leading "parallel" axis -> both TCs on v7x


def _round_up(x: int, m: int) -> int:
    return ((x + m - 1) // m) * m


def _neg_sum_kernel(x_ref, o_ref, *, block_rows, steps, total_rows, needs_mask):
    """Accumulate partial sums of x into a resident (8,128) f32 output block."""
    s = pl.program_id(0)   # "parallel" split (one per TensorCore on v7x)
    j = pl.program_id(1)   # "arbitrary" reduction step within the split

    @pl.when(j == 0)
    def _():
        o_ref[...] = jnp.zeros_like(o_ref)

    x = x_ref[...].astype(jnp.float32)
    if needs_mask:
        # Mask rows past the true extent (partial boundary block, or
        # duplicate/overhang steps introduced by the 2-way split).
        blk = s * steps + j
        row0 = blk * block_rows
        row_ids = row0 + lax.broadcasted_iota(jnp.int32, x.shape, 0)
        x = jnp.where(row_ids < total_rows, x, 0.0)

    # Pure VPU accumulation: fold the big block down to one (8,128) vreg tile.
    o_ref[...] += x.reshape(-1, _SUBLANES, _LANES).sum(axis=0)


def minus_loss(act: jax.Array) -> jax.Array:
    """Pallas equivalent of `minusLoss()(act)` == -act.sum()."""
    orig_dtype = act.dtype
    out_dtype = orig_dtype if jnp.issubdtype(orig_dtype, jnp.floating) else jnp.float32
    # TODO(synk): torch.sum on integer tensors promotes to int64; we return float32.

    flat = act.reshape(-1)
    n = flat.shape[0]
    if n == 0:
        return jnp.zeros((), dtype=out_dtype)

    rem = n % _LANES
    rows = (n - rem) // _LANES
    if rows == 0:
        # Fewer than 128 elements: not worth launching a kernel.
        return (-jnp.sum(flat.astype(jnp.float32))).astype(out_dtype)

    if rem:
        # Only the (rare) non-multiple-of-128 case pays a prefix-slice copy;
        # the <128-element tail is reduced with plain JAX and added below.
        main = flat[: n - rem]
        tail_sum = jnp.sum(flat[n - rem:].astype(jnp.float32))
    else:
        main = flat          # zero-copy
        tail_sum = None
    x2d = main.reshape(rows, _LANES)   # contiguous reshape: no HBM copy

    # Block sizing: large blocks to amortise per-step overhead, with row count
    # aligned to the dtype's native sublane packing (8/16/32 for 4/2/1 bytes).
    itemsize = jnp.dtype(x2d.dtype).itemsize
    sub_mult = {1: 32, 2: 16}.get(itemsize, _SUBLANES)
    max_rows = max(sub_mult,
                   (_MAX_BLOCK_BYTES // (_LANES * itemsize)) // sub_mult * sub_mult)
    block_rows = min(max_rows, _round_up(rows, sub_mult))

    nblocks = pl.cdiv(rows, block_rows)
    steps = pl.cdiv(nblocks, _NUM_SPLITS)
    needs_mask = (nblocks * block_rows != rows) or (_NUM_SPLITS * steps != nblocks)

    kernel = functools.partial(
        _neg_sum_kernel,
        block_rows=block_rows, steps=steps, total_rows=rows, needs_mask=needs_mask,
    )

    def in_index(s, j):
        # Clamp so overhang steps re-read a valid block (their contribution is
        # masked to zero in-kernel) instead of issuing an out-of-bounds DMA.
        return (jnp.minimum(s * steps + j, nblocks - 1), 0)

    partials = pl.pallas_call(
        kernel,
        out_shape=jax.ShapeDtypeStruct((_NUM_SPLITS * _SUBLANES, _LANES), jnp.float32),
        grid_spec=pltpu.PrefetchScalarGridSpec(
            num_scalar_prefetch=0,
            grid=(_NUM_SPLITS, steps),
            in_specs=[pl.BlockSpec((block_rows, _LANES), in_index)],
            out_specs=pl.BlockSpec((_SUBLANES, _LANES), lambda s, j: (s, 0)),
        ),
        compiler_params=pltpu.CompilerParams(
            dimension_semantics=("parallel", "arbitrary"),
            vmem_limit_bytes=32 * 1024 * 1024,
        ),
    )(x2d)

    total = jnp.sum(partials)            # tiny (16,128) reduce, done in plain JAX
    if tail_sum is not None:
        total = total + tail_sum
    return (-total).astype(out_dtype)


if __name__ == "__main__":
    key = jax.random.PRNGKey(0)
    k0, k1 = jax.random.split(key)

    # NCHW-style activation tensor, as would come out of a CNN layer.
    x = jax.random.normal(k0, (2, 4, 16, 16), dtype=jnp.float32)
    loss = minus_loss(x)
    jax.block_until_ready(loss)
    ref = -jnp.sum(x)
    assert jnp.allclose(loss, ref, rtol=1e-5, atol=1e-5), (loss, ref)

    # Odd-sized tensor exercising the partial-block mask + <128-element tail.
    y = jax.random.normal(k1, (3, 5, 7, 11), dtype=jnp.float32)
    loss_y = minus_loss(y)
    jax.block_until_ready(loss_y)
    ref_y = -jnp.sum(y)
    assert jnp.allclose(loss_y, ref_y, rtol=1e-5, atol=1e-5), (loss_y, ref_y)

    print("KERNEL_OK")
</pallas_src>

<mosaic_0001>
module attributes {stable_mosaic.version = 11 : i64} {
  func.func @_neg_sum_kernel(%arg0: i32, %arg1: i32, %arg2: memref<16x128xf32, #tpu.memory_space<vmem>>, %arg3: memref<8x128xf32, #tpu.memory_space<vmem>>) attributes {dimension_semantics = [#tpu.dimension_semantics<parallel>, #tpu.dimension_semantics<arbitrary>], iteration_bounds = array<i64: 2, 1>, scalar_prefetch = 0 : i64, scratch_operands = 0 : i64, tpu.core_type = #tpu.core_type<tc>, window_params = [{transform_indices = @transform_0, window_bounds = array<i64: 16, 128>}, {transform_indices = @transform_1, window_bounds = array<i64: 8, 128>}]} {
    %c0_i32 = arith.constant 0 : i32
    %0 = arith.cmpi eq, %arg1, %c0_i32 : i32
    %1 = arith.extui %0 : i1 to i32
    %c0_i32_0 = arith.constant 0 : i32
    %2 = arith.cmpi ne, %1, %c0_i32_0 : i32
    scf.if %2 {
      %cst_8 = arith.constant 0.000000e+00 : f32
      %19 = vector.broadcast %cst_8 : f32 to vector<8x128xf32>
      %c0_9 = arith.constant 0 : index
      %c0_10 = arith.constant 0 : index
      %20 = vector.load %arg3[%c0_9, %c0_10] : memref<8x128xf32, #tpu.memory_space<vmem>>, vector<8x128xf32>
      tpu.vector_store %arg3[%c0_9, %c0_10], %19 {strides = array<i32>} : memref<8x128xf32, #tpu.memory_space<vmem>>, vector<8x128xf32>,
    } else {
    }
    %c0 = arith.constant 0 : index
    %c0_1 = arith.constant 0 : index
    %3 = vector.load %arg2[%c0, %c0_1] : memref<16x128xf32, #tpu.memory_space<vmem>>, vector<16x128xf32>
    %c1_i32 = arith.constant 1 : i32
    %4 = arith.muli %arg0, %c1_i32 : i32
    %5 = arith.addi %4, %arg1 : i32
    %c16_i32 = arith.constant 16 : i32
    %6 = arith.muli %5, %c16_i32 : i32
    %7 = tpu.iota {dimensions = array<i32: 0>} : vector<16x128xi32>
    %8 = vector.broadcast %6 : i32 to vector<16x128xi32>
    %9 = arith.addi %8, %7 : vector<16x128xi32>
    %c16_i32_2 = arith.constant 16 : i32
    %10 = vector.broadcast %c16_i32_2 : i32 to vector<16x128xi32>
    %11 = arith.cmpi slt, %9, %10 : vector<16x128xi32>
    %cst = arith.constant 0.000000e+00 : f32
    %12 = vector.broadcast %cst : f32 to vector<16x128xf32>
    %13 = arith.select %11, %3, %12 : vector<16x128xi1>, vector<16x128xf32>
    %c0_3 = arith.constant 0 : index
    %c0_4 = arith.constant 0 : index
    %14 = vector.load %arg3[%c0_3, %c0_4] : memref<8x128xf32, #tpu.memory_space<vmem>>, vector<8x128xf32>
    %15 = vector.shape_cast %13 : vector<16x128xf32> to vector<2x8x128xf32>
    %cst_5 = arith.constant dense<0.000000e+00> : vector<8x128xf32>
    %16 = vector.multi_reduction <add>, %15, %cst_5 [0] : vector<2x8x128xf32> to vector<8x128xf32>
    %17 = arith.addf %14, %16 : vector<8x128xf32>
    %c0_6 = arith.constant 0 : index
    %c0_7 = arith.constant 0 : index
    %18 = vector.load %arg3[%c0_6, %c0_7] : memref<8x128xf32, #tpu.memory_space<vmem>>, vector<8x128xf32>
    tpu.vector_store %arg3[%c0_6, %c0_7], %17 {strides = array<i32>} : memref<8x128xf32, #tpu.memory_space<vmem>>, vector<8x128xf32>,
    return
  }
  func.func @transform_0(%arg0: i32, %arg1: i32) -> (i32, i32) {
    %c1_i32 = arith.constant 1 : i32
    %0 = arith.muli %arg0, %c1_i32 : i32
    %1 = arith.addi %0, %arg1 : i32
    %c0_i32 = arith.constant 0 : i32
    %2 = arith.minsi %1, %c0_i32 : i32
    %c0_i32_0 = arith.constant 0 : i32
    %c0_i32_1 = arith.constant 0 : i32
    return %2, %c0_i32_0 : i32, i32
  }
  func.func @transform_1(%arg0: i32, %arg1: i32) -> (i32, i32) {
    %c0_i32 = arith.constant 0 : i32
    %c0_i32_0 = arith.constant 0 : i32
    return %arg0, %c0_i32 : i32, i32
  }
}

</mosaic_0001>

<bundles_post_ra>
// kernel: tpu_custom_call.1
= control target key start
LH: loop header
LB: loop body
LE: loop exit
PB: predicated region body
PF: predicated region fallthrough
CT: control target
= control target key end

     0   :  { %6 = vsyncpa [#allocation3], 0  ;;  %s671_s0 = inlined_call_operand.hbm [shape: f32[16,128], index: 0, kind: input, shape index: {}]   ;;  %s672_s1 = inlined_call_operand.hbm [shape: f32[16,128], index: 1, kind: output, shape index: {}]  }
   0x1   :  { %8 = vsyncpa [#allocation3 + $0x1], 0 }
   0x2   :  { %9 = vsyncpa [#allocation4], 0 }
   0x3   :  { %11 = vsyncpa [#allocation4 + $0x1], 0  ;;  %s525_s6 = smov 0   ;;  %s527_s7 = smov 0  }
   0x4   :  { %s529_s8 = smov 0   ;;  %s531_s9 = smov 0  }
   0x5   :  { %s533_s10 = smov 0   ;;  %s535_s11 = smov 0  }
   0x6   :  { %s537_s12 = smov 0   ;;  %s539_s13 = smov 0  }
   0x7 LB: > { %s275_s14 = sadd.s32 4294967295, %s509_s13   ;;  %s276_s15 = sadd.s32 4294967294, %s509_s13   ;;  %s509_s13 = sphi %s539_s13, %s17_s13   ;;  %s505_s12 = sphi %s537_s12, %s689_s12   ;;  %s501_s11 = sphi %s535_s11, %s688_s11   ;;  %s497_s10 = sphi %s533_s10, %s661_s10   ;;  %s493_s9 = sphi %s531_s9, %s687_s9   ;;  %s489_s8 = sphi %s529_s8, %s686_s8   ;;  %s485_s7 = sphi %s527_s7, %s685_s7   ;;  %s481_s6 = sphi %s525_s6, %s684_s6  }
   0x8   : > { %s29_s16 = sadd.s32 1, %s505_s12  ;;  %p478_p1 = scmp.ne.s32.totalorder %s497_s10, 0 }
   0x9   : > { %p31_p0 = scmp.ge.s32.totalorder %s29_s16, 2  ;;  %p50_p2 = scmp.eq.s32.totalorder %s509_s13, 0 }
   0xa   : > { %p55_p3 = scmp.ne.s32.totalorder %s497_s10, %s493_s9  ;;  %p56_p5 = scmp.eq.s32.totalorder %s275_s14, 0 }
   0xb   : > { %s691_s16 = smov (%p31_p0, %s29_s16), 0  ;;  %p571_p4 = por %p478_p1, %p50_p2 }
   0xc   : > { %p575_p6 = por %p56_p5, %p55_p3  ;;  %s65_s19 = ssub.s32 %s505_s12, %s691_s16 }
   0xd   : > { %p66_p7 = scmp.eq.s32.totalorder %s65_s19, 0  ;;  %s68_s20 = sadd.s32 1, %s489_s8 }
   0xe   : > { %s676_s18 = scalar_select %p575_p6, 1, 0 }
   0xf   : > { %s583_s21 = scalar_select %p66_p7, %s489_s8, %s68_s20  }
  0x10   : > { %p78_p8 = scmp.ne.s32.totalorder %s489_s8, %s485_s7  ;;  %p79_p9 = scmp.eq.s32.totalorder %s275_s14, 1 }
  0x11   : > { %p84_p10 = scmp.ne.s32.totalorder %s485_s7, %s481_s6  ;;  %p85_p11 = scmp.eq.s32.totalorder %s276_s15, 1 }
  0x12   : > { %p589_p12 = por %p79_p9, %p78_p8  ;;  %p303_p1 = scmp.lt.s32.totalorder %s509_s13, 2 }
  0x13   : > { %p594_p0 = por %p85_p11, %p84_p10  ;;  %s511_s24 = smov [#allocation2]  }
  0x14   : > { %s677_s22 = scalar_select %p589_p12, 1, 0 }
  0x15   : > { %s678_s23 = scalar_select %p594_p0, 1, 0 }
  0x16   : > { %s119_s25 = sshll.u32 %s511_s24, 4  ;;  %p601_p2 = pnand %p303_p1, %p571_p4  ;;  %s120_s25 = int_to_ptr.vmem [resolvable:$true] %s119_s25 }
  0x17   : > { %s380_s29 = scalar_lea.hbm %s671_s0, 256 }
  0x18   : > { %p381_p3 = scmp.ne.s32.totalorder %s671_s0, %s380_s29  ;;  %p382_p5 = pneg %p601_p2 }
  0x19   : > { %p387_p9 = scmp.lt.s32.totalorder %s380_s29, %s380_s29 }
  0x1a   : > { %p383_p7 = pnand %p382_p5, %p381_p3 }
  0x1c   : > { %p384_p8 = pneg %p383_p7 }
  0x1e   : > { %p389_p10 = pnand %p387_p9, %p384_p8 }
  0x20   : > { %392 = shalt.err (!%p389_p10)
}
  0x21   : > { %s393_s3 = scalar_lea.vmem %s120_s25, 256  ;;  %s400_s4 = scalar_lea.vmem %s120_s25, 512 }
  0x22   : > { %p394_p4 = scmp.ne.s32.totalorder %s120_s25, %s393_s3  ;;  %p401_p13 = scmp.lt.s32.totalorder %s120_s25, %s120_s25 }
  0x23   : > { %p402_p0 = scmp.lt.s32.totalorder %s400_s4, %s393_s3 }
  0x24   : > { %p396_p11 = pnand %p394_p4, %p382_p5 }
  0x25   : > { %p403_p12 = por %p402_p0, %p401_p13 }
  0x26   : > { %p397_p1 = pneg %p396_p11 }
  0x28   : > { %p404_p6 = pnand %p403_p12, %p397_p1 }
  0x2a   : > { %407 = shalt.err (!%p404_p6)
}
  0x2b   : > { %s512_s5 = smov 128   ;;  %s513_s9 = smov 8  }
  0x2c   : > { %298 = dma.hbm_to_vmem [thread:$0]  (!%p601_p2), %s671_s0, 256, %s120_s25, [#allocation3], %s512_s5, %s512_s5, %s513_s9  }
  0x2d   : > { %p282_p3 = scmp.ge.s32.totalorder %s509_s13, 1  ;;  %p127_p7 = scmp.lt.s32.totalorder %s509_s13, 3 }
  0x2f   : > { %p128_p5 = pnand %p282_p3, %p127_p7 }
  0x30   : > { %s133_s17 = sand.u32 (!%p128_p5), 1, %s497_s10   ;;  %p680_p6 = scmp.ne.s32.totalorder (!%p128_p5), %s676_s18, 0 }
  0x31   : > { %131 = sbr.rel (%p128_p5) target bundleno = 81 (0x51), region = 24  ;;  %s283_s19 = sshll.u32 (!%p128_p5), %s133_s17, 4 }
  0x32   : > { %s134_s20 = scalar_lea.sflag (!%p128_p5), [#allocation3], %s133_s17  ;;  %s137_s24 = scalar_lea.vmem (!%p128_p5), [#allocation2], %s283_s19 }
  0x36   : > { %471 = dma.done.wait (%p680_p6), %s134_s20, 256  }
  0x37   : > { %473 = vsyncadd (%p680_p6), %s134_s20, 4294967040  ;;  %s153_s26 = sand.u32 1, %s485_s7   ;;  %s285_s25 = sshll.u32 %s501_s11, 4  ;;  %v169_v0 = vlaneseq  ;;  %v165_v6 = vld [vmem:[%s137_s24] sm:$0xff]  ;;  %v166_v7 = vld [vmem:[%s137_s24 + $0x8] sm:$0xff] }
  0x38   : > { %v172_v1 = vstv %s285_s25  ;;  %s284_s27 = sshll.u32 %s153_s26, 3  ;;  %s287_s18 = sshll.u32 %s501_s11, 7 }
  0x39   : > { %v170_v2 = vshrl.u32 %v169_v0, 7  ;;  %s155_s28 = scalar_lea.vmem [#allocation5], %s284_s27  ;;  %s195_s3 = scalar_lea.hbm %s672_s1, %s287_s18 }
  0x3a   : > { %s197_s29 = sshll.u32 %s155_s28, 4  ;;  %s184_s4 = scalar_lea.sflag [#allocation4], %s153_s26  ;;  %s198_s29 = int_to_ptr.vmem [resolvable:$true] %s197_s29 }
  0x3b   : > { %v171_v3 = vadd.s32 8, %v170_v2  ;;  %v173_v4 = vadd.s32 %v172_v1, %v170_v2  ;;  %s408_s5 = scalar_lea.vmem %s198_s29, 128  ;;  %p681_p13 = scmp.ne.s32.totalorder %s677_s22, 0 }
  0x3c   : > { %p409_p12 = scmp.ne.s32.totalorder %s198_s29, %s408_s5  ;;  %s514_s9 = smov [#allocation5]  }
  0x3d   : > { %v174_v5 = vadd.s32 %v172_v1, %v171_v3  ;;  %vm175_vm0 = vcmp.lt.s32.totalorder %v173_v4, 16  ;;  %s412_s14 = sshll.u32 %s514_s9, 4  ;;  %s413_s14 = int_to_ptr.vmem [resolvable:$false] %s412_s14 }
  0x3e   : > { %v177_v8 = vsel %vm175_vm0, %v165_v6, 0.0  ;;  %p410_p0 = pnand %p409_p12, %p681_p13  ;;  %s414_s15 = scalar_lea.vmem %s413_s14, 256 }
  0x3f   : > { %vm176_vm1 = vcmp.lt.s32.totalorder %v174_v5, 16  ;;  %p415_p8 = scmp.lt.s32.totalorder %s198_s29, %s413_s14  ;;  %p416_p9 = scmp.lt.s32.totalorder %s414_s15, %s408_s5 }
  0x40   : > { %v178_v9 = vsel %vm176_vm1, %v166_v7, 0.0  ;;  %p411_p2 = pneg %p410_p0 }
  0x41   : > { %v180_v10 = vadd.f32 %v178_v9, %v177_v8  ;;  %p417_p10 = por %p416_p9, %p415_p8 }
  0x43   : > { %182 = vst [vmem:[%s155_s28] sm:$0xff] %v180_v10  ;;  %p418_p4 = pnand %p417_p10, %p411_p2 }
  0x45   : > { %421 = shalt.err (!%p418_p4)
}
  0x46   : > { %s422_s11 = scalar_lea.hbm %s195_s3, 128  ;;  %s426_s20 = scalar_lea.hbm %s672_s1, 256 }
  0x47   : > { %p423_p11 = scmp.ne.s32.totalorder %s195_s3, %s422_s11  ;;  %p427_p7 = scmp.lt.s32.totalorder %s195_s3, %s672_s1 }
  0x48   : > { %p428_p5 = scmp.lt.s32.totalorder %s426_s20, %s422_s11 }
  0x49   : > { %p424_p1 = pnand %p423_p11, %p681_p13 }
  0x4a   : > { %p429_p6 = por %p428_p5, %p427_p7 }
  0x4b   : > { %p425_p3 = pneg %p424_p1 }
  0x4d   : > { %p430_p12 = pnand %p429_p6, %p425_p3 }
  0x4f   : > { %433 = shalt.err (!%p430_p12)
}
  0x50   : > { %293 = dma.vmem_to_hbm [thread:$0]  (%p681_p13), %s198_s29, 128, %s195_s3, %s184_s4  }
  0x51 PF: > { %s209_s25 = sand.u32 1, %s481_s6   ;;  %p682_p0 = scmp.ne.s32.totalorder %s678_s23, 0 }
  0x52   : > { %p683_p2 = scmp.ge.s32.totalorder %s509_s13, 2  ;;  %s210_s27 = scalar_lea.sflag [#allocation4], %s209_s25 }
  0x54   : > { %p300_p8 = pnand %p683_p2, %p682_p0 }
  0x56   : > { %p301_p9 = pneg %p300_p8 }
  0x58   : > { %475 = dma.done.wait (%p301_p9), %s210_s27, 128  }
  0x59   : > { %477 = vsyncadd (%p301_p9), %s210_s27, 4294967168  ;;  %s17_s13 = sadd.s32 1, %s509_s13   ;;  %s684_s6 = smov %s485_s7 }
  0x5a   : > { %p14_p10 = scmp.ge.s32.totalorder %s17_s13, 4   ;;  %s685_s7 = smov %s489_s8 }
  0x5b   : > { %s686_s8 = smov %s583_s21  ;;  %s687_s9 = smov %s497_s10 }
  0x5c   : > { %s661_s10 = smov 0   ;;  %s688_s11 = smov %s505_s12 }
  0x5d   : > { %s689_s12 = smov %s691_s16  ;;  %16 = sbr.rel (!%p14_p10) target bundleno = 7 (0x7), region = 73 }
  0x62   :  { %215 = vsyncpa [#allocation3], 1 }
  0x63   :  { %217 = vsyncpa [#allocation3 + $0x1], 1 }
  0x64   :  { %218 = vsyncpa [#allocation4], 1 }
  0x65   :  { %220 = vsyncpa [#allocation4 + $0x1], 1 }

</bundles_post_ra>
